<compile_context>
chip_gen: v6e
topology: v6e:2x2x1
jax: 0.10.0
libtpu: 0.0.40
codegen_flags: <defaults>
</compile_context>

<pallas_src>
from functools import partial

import jax
import jax.numpy as jnp
from jax.experimental import pallas as pl
from jax.experimental.pallas import tpu as pltpu


# Original torch layer sizes, in order.
_DIMS = [784, 128, 64, 12, 3, 12, 64, 128, 784]
# ReLU after every torch layer except encoder_lin4 (idx 3) and decoder_lin4 (idx 7).
_RELU_AFTER = [True, True, True, False, True, True, True, False]

# Fused layout (12->3 and 3->12 folded into one 12->12 layer; the ReLU that
# followed decoder_lin1 is inherited by the fused layer).
_FUSED_IN = [784, 128, 64, 12, 12, 64, 128]
_FUSED_RELU = [True, True, True, True, True, True, False]

_TM_MIN = 256    # keep per-tile MXU weight swaps amortized for large batches
_TM_MAX = 1024   # cap for v7x (64 MiB physical VMEM / 32 MiB scoped)


def _round_up(x, m):
    return (x + m - 1) // m * m


def _choose_tile(batch):
    """Return (tm, padded_batch).

    Goals (perf review):
      * grid >= 2 and even so v7x's two TensorCores both get work,
      * grid >= 4 for large batches so the software pipeline can hide DMA,
      * tm a multiple of 16 (f32 + bf16 sublane packing), <= 1024,
      * prefer a tm that divides the batch exactly (no pad / no output slice);
        pad minimally only when no such tm exists.
    """
    if batch < 64:
        # Tiny batch: one full-extent block (block dims == array dims is always
        # legal); splitting is not worth it.
        return max(batch, 1), max(batch, 1)

    target_steps = 2 if batch <= 2 * _TM_MIN else 4

    # 1) Exact divisor, multiple of 16, as large as possible, even grid.
    hi = min(_TM_MAX, batch // target_steps)
    hi -= hi % 16
    best_odd = None
    for tm in range(hi, 15, -16):
        if batch % tm == 0:
            if (batch // tm) % 2 == 0:
                return tm, batch
            if best_odd is None:
                best_odd = tm
    if best_odd is not None and best_odd >= 64:
        return best_odd, batch

    # 2) No good divisor: pad minimally, targeting `target_steps` grid steps.
    tm = min(_TM_MAX, max(16, _round_up(pl.cdiv(batch, target_steps), 16)))
    return tm, _round_up(batch, tm)


def _linear_ae_kernel(x_ref, *refs):
    """refs = (w0, b0, ..., w6, b6, out_ref).

    x_ref: [TM, 784] f32 tile (cast to bf16 in-kernel).
    w_i:   [in, out] bf16 (resident across the grid).
    b_i:   [1, out]  f32.
    out_ref: [TM, 784] tile in out_dtype (bf16 by default).
    """
    out_ref = refs[-1]
    prefs = refs[:-1]
    n_layers = len(prefs) // 2

    # bf16 cast on the VPU -- free (hidden under DMA), avoids a wrapper-side
    # HBM convert pass.
    h = x_ref[...].astype(jnp.bfloat16)
    for layer in range(n_layers):
        w = prefs[2 * layer][...]         # bf16 [in, out]
        b = prefs[2 * layer + 1][...]     # f32  [1, out]
        acc = jnp.dot(h, w, preferred_element_type=jnp.float32) + b   # MXU, f32 accum
        if _FUSED_RELU[layer]:
            acc = jnp.maximum(acc, 0.0)
        h = acc if layer == n_layers - 1 else acc.astype(jnp.bfloat16)
    out_ref[...] = h.astype(out_ref.dtype)


def prepare_params(torch_params):
    """One-time prep: torch-layout (W[out,in] f32, b[out] f32) x8 ->
    kernel-layout flat tuple (w0,b0,...,w6,b6) with
      * W pre-transposed to [in, out] and cast to bf16,
      * b reshaped to [1, out], kept f32,
      * the 12->3->12 bottleneck folded into a single exact 12->12 layer
        (W34 = W4k @ W5k, b34 = b4 @ W5k + b5, computed in f32)."""
    ws = [jnp.asarray(w, jnp.float32).T for w, _ in torch_params]   # [in, out]
    bs = [jnp.asarray(b, jnp.float32) for _, b in torch_params]

    w_fused = ws[3] @ ws[4]            # [12, 12]
    b_fused = bs[3] @ ws[4] + bs[4]    # [12]
    ws_f = ws[:3] + [w_fused] + ws[5:]
    bs_f = bs[:3] + [b_fused] + bs[5:]

    flat = []
    for w, b in zip(ws_f, bs_f):
        flat.append(w.astype(jnp.bfloat16))
        flat.append(b.reshape(1, -1).astype(jnp.float32))
    return tuple(flat)


@partial(jax.jit, static_argnames=("out_dtype",))
def linear_ae_forward(x, kparams, out_dtype=jnp.bfloat16):
    """x: [B, 784] f32 (streamed as-is; bf16 cast happens in-kernel).
    kparams: output of prepare_params.  Returns [B, 784] in out_dtype."""
    batch = x.shape[0]
    tm, padded_b = _choose_tile(batch)

    if padded_b != batch:
        # Only when no 16-aligned tile divides the batch exactly.
        x = jnp.pad(x, ((0, padded_b - batch), (0, 0)))

    grid = (padded_b // tm,)

    # Weights/biases: constant block index -> DMA'd once, resident across the grid.
    param_specs = [pl.BlockSpec(p.shape, lambda i: (0, 0)) for p in kparams]
    in_specs = [pl.BlockSpec((tm, _FUSED_IN[0]), lambda i: (i, 0))] + param_specs
    out_spec = pl.BlockSpec((tm, _DIMS[-1]), lambda i: (i, 0))

    out = pl.pallas_call(
        _linear_ae_kernel,
        out_shape=jax.ShapeDtypeStruct((padded_b, _DIMS[-1]), out_dtype),
        grid=grid,
        in_specs=in_specs,
        out_specs=out_spec,
        compiler_params=pltpu.CompilerParams(
            # batch tiles are independent -> megacore-shardable on v7x
            dimension_semantics=("parallel",),
            # ~20 MiB footprint at tm=1024 (f32 in + bf16 out double-buffered,
            # resident bf16 weights, f32 intermediates); fits all generations.
            vmem_limit_bytes=32 << 20,
        ),
    )(x, *kparams)
    return out if padded_b == batch else out[:batch]


def init_params(key):
    """Deterministic init matching torch.nn.Linear default U(-1/sqrt(in), 1/sqrt(in))."""
    params = []
    for i in range(8):
        fan_in, fan_out = _DIMS[i], _DIMS[i + 1]
        key, kw, kb = jax.random.split(key, 3)
        bound = 1.0 / jnp.sqrt(jnp.float32(fan_in))
        w = jax.random.uniform(kw, (fan_out, fan_in), jnp.float32, -bound, bound)
        b = jax.random.uniform(kb, (fan_out,), jnp.float32, -bound, bound)
        params.append((w, b))
    return params


def reference_forward(x, params):
    """Pure-JAX f32 reference with the original layered torch semantics."""
    h = x
    for layer, (w, b) in enumerate(params):
        h = h @ w.T + b
        if _RELU_AFTER[layer]:
            h = jnp.maximum(h, 0.0)
    return h


def mirror_reference(x, kparams):
    """Pure-JAX mirror of the kernel's numerics (fused bottleneck, bf16 matmul
    inputs, f32 accumulation) for a tight correctness check.  Returns f32
    (pre-output-cast) values."""
    h = x.astype(jnp.bfloat16)
    n_layers = len(kparams) // 2
    for layer in range(n_layers):
        w = kparams[2 * layer]
        b = kparams[2 * layer + 1]
        acc = jnp.dot(h, w, preferred_element_type=jnp.float32) + b
        if _FUSED_RELU[layer]:
            acc = jnp.maximum(acc, 0.0)
        h = acc if layer == n_layers - 1 else acc.astype(jnp.bfloat16)
    return h


if __name__ == "__main__":
    key = jax.random.PRNGKey(0)
    key, kx = jax.random.split(key)

    params = init_params(key)
    kparams = prepare_params(params)  # one-time kernel-layout prep (hoisted)

    # batch=2   -> single full-extent tile, grid=1, no padding.
    # batch=64  -> tm=32, grid=2 (even, no padding; exercises megacore split).
    # batch=1000-> tm=256, grid=4 with minimal padding (no 16-aligned divisor).
    for batch in (2, 64, 1000):
        kxb = jax.random.fold_in(kx, batch)
        x = jax.random.normal(kxb, (batch, 784), dtype=jnp.float32)

        out = jax.block_until_ready(linear_ae_forward(x, kparams))
        assert out.shape == (batch, 784), out.shape
        assert out.dtype == jnp.bfloat16, out.dtype
        out_f32 = out.astype(jnp.float32)

        # Tight check against a pure-JAX mirror of the kernel numerics
        # (only differences: accumulation order + final bf16 rounding).
        mref = mirror_reference(x, kparams)
        merr = float(jnp.max(jnp.abs(out_f32 - mref)))
        mscale = float(jnp.max(jnp.abs(mref)))
        assert merr <= 2e-2 + 2e-2 * mscale, ("mirror mismatch", merr, mscale)

        # Loose sanity check against the original f32 layered torch semantics
        # (bf16 matmul inputs / bf16 output change rounding).
        fref = reference_forward(x, params)
        ferr = float(jnp.max(jnp.abs(out_f32 - fref)))
        fscale = float(jnp.max(jnp.abs(fref)))
        assert ferr <= 5e-2 + 5e-2 * fscale, ("f32 reference mismatch", ferr, fscale)

    print("KERNEL_OK")
</pallas_src>

<mosaic_0001>
module attributes {stable_mosaic.version = 11 : i64} {
  func.func @_linear_ae_kernel(%arg0: i32, %arg1: memref<2x784xf32, #tpu.memory_space<vmem>>, %arg2: memref<784x128xbf16, #tpu.memory_space<vmem>>, %arg3: memref<1x128xf32, #tpu.memory_space<vmem>>, %arg4: memref<128x64xbf16, #tpu.memory_space<vmem>>, %arg5: memref<1x64xf32, #tpu.memory_space<vmem>>, %arg6: memref<64x12xbf16, #tpu.memory_space<vmem>>, %arg7: memref<1x12xf32, #tpu.memory_space<vmem>>, %arg8: memref<12x12xbf16, #tpu.memory_space<vmem>>, %arg9: memref<1x12xf32, #tpu.memory_space<vmem>>, %arg10: memref<12x64xbf16, #tpu.memory_space<vmem>>, %arg11: memref<1x64xf32, #tpu.memory_space<vmem>>, %arg12: memref<64x128xbf16, #tpu.memory_space<vmem>>, %arg13: memref<1x128xf32, #tpu.memory_space<vmem>>, %arg14: memref<128x784xbf16, #tpu.memory_space<vmem>>, %arg15: memref<1x784xf32, #tpu.memory_space<vmem>>, %arg16: memref<2x784xbf16, #tpu.memory_space<vmem>>) attributes {dimension_semantics = [#tpu.dimension_semantics<parallel>], iteration_bounds = array<i64: 1>, scalar_prefetch = 0 : i64, scratch_operands = 0 : i64, tpu.core_type = #tpu.core_type<tc>, window_params = [{transform_indices = @transform_0, window_bounds = array<i64: 2, 784>}, {pipeline_mode = #tpu.pipeline_mode<synchronous>, transform_indices = @transform_1, window_bounds = array<i64: 784, 128>}, {pipeline_mode = #tpu.pipeline_mode<synchronous>, transform_indices = @transform_2, window_bounds = array<i64: 1, 128>}, {pipeline_mode = #tpu.pipeline_mode<synchronous>, transform_indices = @transform_3, window_bounds = array<i64: 128, 64>}, {pipeline_mode = #tpu.pipeline_mode<synchronous>, transform_indices = @transform_4, window_bounds = array<i64: 1, 64>}, {pipeline_mode = #tpu.pipeline_mode<synchronous>, transform_indices = @transform_5, window_bounds = array<i64: 64, 12>}, {pipeline_mode = #tpu.pipeline_mode<synchronous>, transform_indices = @transform_6, window_bounds = array<i64: 1, 12>}, {pipeline_mode = #tpu.pipeline_mode<synchronous>, transform_indices = @transform_7, window_bounds = array<i64: 12, 12>}, {pipeline_mode = #tpu.pipeline_mode<synchronous>, transform_indices = @transform_8, window_bounds = array<i64: 1, 12>}, {pipeline_mode = #tpu.pipeline_mode<synchronous>, transform_indices = @transform_9, window_bounds = array<i64: 12, 64>}, {pipeline_mode = #tpu.pipeline_mode<synchronous>, transform_indices = @transform_10, window_bounds = array<i64: 1, 64>}, {pipeline_mode = #tpu.pipeline_mode<synchronous>, transform_indices = @transform_11, window_bounds = array<i64: 64, 128>}, {pipeline_mode = #tpu.pipeline_mode<synchronous>, transform_indices = @transform_12, window_bounds = array<i64: 1, 128>}, {pipeline_mode = #tpu.pipeline_mode<synchronous>, transform_indices = @transform_13, window_bounds = array<i64: 128, 784>}, {pipeline_mode = #tpu.pipeline_mode<synchronous>, transform_indices = @transform_14, window_bounds = array<i64: 1, 784>}, {transform_indices = @transform_15, window_bounds = array<i64: 2, 784>}]} {
    %c0 = arith.constant 0 : index
    %c0_0 = arith.constant 0 : index
    %0 = vector.load %arg1[%c0, %c0_0] : memref<2x784xf32, #tpu.memory_space<vmem>>, vector<2x784xf32>
    %1 = arith.truncf %0 : vector<2x784xf32> to vector<2x784xbf16>
    %c0_1 = arith.constant 0 : index
    %c0_2 = arith.constant 0 : index
    %2 = vector.load %arg2[%c0_1, %c0_2] : memref<784x128xbf16, #tpu.memory_space<vmem>>, vector<784x128xbf16>
    %c0_3 = arith.constant 0 : index
    %c0_4 = arith.constant 0 : index
    %3 = vector.load %arg3[%c0_3, %c0_4] : memref<1x128xf32, #tpu.memory_space<vmem>>, vector<1x128xf32>
    %cst = arith.constant dense<0.000000e+00> : vector<2x128xf32>
    %4 = tpu.matmul %1, %2, %cst {dimension_numbers = #tpu.dot_dimension_numbers<[1], [0], [0], [1], [0, 0, 1, 1], [], []>} : vector<2x784xbf16>, vector<784x128xbf16>, vector<2x128xf32> -> vector<2x128xf32>
    %5 = vector.broadcast %3 : vector<1x128xf32> to vector<2x128xf32>
    %6 = arith.addf %4, %5 : vector<2x128xf32>
    %cst_5 = arith.constant 0.000000e+00 : f32
    %7 = vector.broadcast %cst_5 : f32 to vector<2x128xf32>
    %8 = arith.maximumf %6, %7 : vector<2x128xf32>
    %9 = arith.truncf %8 : vector<2x128xf32> to vector<2x128xbf16>
    %c0_6 = arith.constant 0 : index
    %c0_7 = arith.constant 0 : index
    %10 = vector.load %arg4[%c0_6, %c0_7] : memref<128x64xbf16, #tpu.memory_space<vmem>>, vector<128x64xbf16>
    %c0_8 = arith.constant 0 : index
    %c0_9 = arith.constant 0 : index
    %11 = vector.load %arg5[%c0_8, %c0_9] : memref<1x64xf32, #tpu.memory_space<vmem>>, vector<1x64xf32>
    %cst_10 = arith.constant dense<0.000000e+00> : vector<2x64xf32>
    %12 = tpu.matmul %9, %10, %cst_10 {dimension_numbers = #tpu.dot_dimension_numbers<[1], [0], [0], [1], [0, 0, 1, 1], [], []>} : vector<2x128xbf16>, vector<128x64xbf16>, vector<2x64xf32> -> vector<2x64xf32>
    %13 = vector.broadcast %11 : vector<1x64xf32> to vector<2x64xf32>
    %14 = arith.addf %12, %13 : vector<2x64xf32>
    %cst_11 = arith.constant 0.000000e+00 : f32
    %15 = vector.broadcast %cst_11 : f32 to vector<2x64xf32>
    %16 = arith.maximumf %14, %15 : vector<2x64xf32>
    %17 = arith.truncf %16 : vector<2x64xf32> to vector<2x64xbf16>
    %c0_12 = arith.constant 0 : index
    %c0_13 = arith.constant 0 : index
    %18 = vector.load %arg6[%c0_12, %c0_13] : memref<64x12xbf16, #tpu.memory_space<vmem>>, vector<64x12xbf16>
    %c0_14 = arith.constant 0 : index
    %c0_15 = arith.constant 0 : index
    %19 = vector.load %arg7[%c0_14, %c0_15] : memref<1x12xf32, #tpu.memory_space<vmem>>, vector<1x12xf32>
    %cst_16 = arith.constant dense<0.000000e+00> : vector<2x12xf32>
    %20 = tpu.matmul %17, %18, %cst_16 {dimension_numbers = #tpu.dot_dimension_numbers<[1], [0], [0], [1], [0, 0, 1, 1], [], []>} : vector<2x64xbf16>, vector<64x12xbf16>, vector<2x12xf32> -> vector<2x12xf32>
    %21 = vector.broadcast %19 : vector<1x12xf32> to vector<2x12xf32>
    %22 = arith.addf %20, %21 : vector<2x12xf32>
    %cst_17 = arith.constant 0.000000e+00 : f32
    %23 = vector.broadcast %cst_17 : f32 to vector<2x12xf32>
    %24 = arith.maximumf %22, %23 : vector<2x12xf32>
    %25 = arith.truncf %24 : vector<2x12xf32> to vector<2x12xbf16>
    %c0_18 = arith.constant 0 : index
    %c0_19 = arith.constant 0 : index
    %26 = vector.load %arg8[%c0_18, %c0_19] : memref<12x12xbf16, #tpu.memory_space<vmem>>, vector<12x12xbf16>
    %c0_20 = arith.constant 0 : index
    %c0_21 = arith.constant 0 : index
    %27 = vector.load %arg9[%c0_20, %c0_21] : memref<1x12xf32, #tpu.memory_space<vmem>>, vector<1x12xf32>
    %cst_22 = arith.constant dense<0.000000e+00> : vector<2x12xf32>
    %28 = tpu.matmul %25, %26, %cst_22 {dimension_numbers = #tpu.dot_dimension_numbers<[1], [0], [0], [1], [0, 0, 1, 1], [], []>} : vector<2x12xbf16>, vector<12x12xbf16>, vector<2x12xf32> -> vector<2x12xf32>
    %29 = vector.broadcast %27 : vector<1x12xf32> to vector<2x12xf32>
    %30 = arith.addf %28, %29 : vector<2x12xf32>
    %cst_23 = arith.constant 0.000000e+00 : f32
    %31 = vector.broadcast %cst_23 : f32 to vector<2x12xf32>
    %32 = arith.maximumf %30, %31 : vector<2x12xf32>
    %33 = arith.truncf %32 : vector<2x12xf32> to vector<2x12xbf16>
    %c0_24 = arith.constant 0 : index
    %c0_25 = arith.constant 0 : index
    %34 = vector.load %arg10[%c0_24, %c0_25] : memref<12x64xbf16, #tpu.memory_space<vmem>>, vector<12x64xbf16>
    %c0_26 = arith.constant 0 : index
    %c0_27 = arith.constant 0 : index
    %35 = vector.load %arg11[%c0_26, %c0_27] : memref<1x64xf32, #tpu.memory_space<vmem>>, vector<1x64xf32>
    %cst_28 = arith.constant dense<0.000000e+00> : vector<2x64xf32>
    %36 = tpu.matmul %33, %34, %cst_28 {dimension_numbers = #tpu.dot_dimension_numbers<[1], [0], [0], [1], [0, 0, 1, 1], [], []>} : vector<2x12xbf16>, vector<12x64xbf16>, vector<2x64xf32> -> vector<2x64xf32>
    %37 = vector.broadcast %35 : vector<1x64xf32> to vector<2x64xf32>
    %38 = arith.addf %36, %37 : vector<2x64xf32>
    %cst_29 = arith.constant 0.000000e+00 : f32
    %39 = vector.broadcast %cst_29 : f32 to vector<2x64xf32>
    %40 = arith.maximumf %38, %39 : vector<2x64xf32>
    %41 = arith.truncf %40 : vector<2x64xf32> to vector<2x64xbf16>
    %c0_30 = arith.constant 0 : index
    %c0_31 = arith.constant 0 : index
    %42 = vector.load %arg12[%c0_30, %c0_31] : memref<64x128xbf16, #tpu.memory_space<vmem>>, vector<64x128xbf16>
    %c0_32 = arith.constant 0 : index
    %c0_33 = arith.constant 0 : index
    %43 = vector.load %arg13[%c0_32, %c0_33] : memref<1x128xf32, #tpu.memory_space<vmem>>, vector<1x128xf32>
    %cst_34 = arith.constant dense<0.000000e+00> : vector<2x128xf32>
    %44 = tpu.matmul %41, %42, %cst_34 {dimension_numbers = #tpu.dot_dimension_numbers<[1], [0], [0], [1], [0, 0, 1, 1], [], []>} : vector<2x64xbf16>, vector<64x128xbf16>, vector<2x128xf32> -> vector<2x128xf32>
    %45 = vector.broadcast %43 : vector<1x128xf32> to vector<2x128xf32>
    %46 = arith.addf %44, %45 : vector<2x128xf32>
    %cst_35 = arith.constant 0.000000e+00 : f32
    %47 = vector.broadcast %cst_35 : f32 to vector<2x128xf32>
    %48 = arith.maximumf %46, %47 : vector<2x128xf32>
    %49 = arith.truncf %48 : vector<2x128xf32> to vector<2x128xbf16>
    %c0_36 = arith.constant 0 : index
    %c0_37 = arith.constant 0 : index
    %50 = vector.load %arg14[%c0_36, %c0_37] : memref<128x784xbf16, #tpu.memory_space<vmem>>, vector<128x784xbf16>
    %c0_38 = arith.constant 0 : index
    %c0_39 = arith.constant 0 : index
    %51 = vector.load %arg15[%c0_38, %c0_39] : memref<1x784xf32, #tpu.memory_space<vmem>>, vector<1x784xf32>
    %cst_40 = arith.constant dense<0.000000e+00> : vector<2x784xf32>
    %52 = tpu.matmul %49, %50, %cst_40 {dimension_numbers = #tpu.dot_dimension_numbers<[1], [0], [0], [1], [0, 0, 1, 1], [], []>} : vector<2x128xbf16>, vector<128x784xbf16>, vector<2x784xf32> -> vector<2x784xf32>
    %53 = vector.broadcast %51 : vector<1x784xf32> to vector<2x784xf32>
    %54 = arith.addf %52, %53 : vector<2x784xf32>
    %55 = arith.truncf %54 : vector<2x784xf32> to vector<2x784xbf16>
    %c0_41 = arith.constant 0 : index
    %c0_42 = arith.constant 0 : index
    %56 = vector.load %arg16[%c0_41, %c0_42] : memref<2x784xbf16, #tpu.memory_space<vmem>>, vector<2x784xbf16>
    tpu.vector_store %arg16[%c0_41, %c0_42], %55 {strides = array<i32>} : memref<2x784xbf16, #tpu.memory_space<vmem>>, vector<2x784xbf16>,
    return
  }
  func.func @transform_0(%arg0: i32) -> (i32, i32) {
    %c0_i32 = arith.constant 0 : i32
    %c0_i32_0 = arith.constant 0 : i32
    return %arg0, %c0_i32 : i32, i32
  }
  func.func @transform_1(%arg0: i32) -> (i32, i32) {
    %c0_i32 = arith.constant 0 : i32
    %c0_i32_0 = arith.constant 0 : i32
    %c0_i32_1 = arith.constant 0 : i32
    return %c0_i32, %c0_i32_0 : i32, i32
  }
  func.func @transform_2(%arg0: i32) -> (i32, i32) {
    %c0_i32 = arith.constant 0 : i32
    %c0_i32_0 = arith.constant 0 : i32
    %c0_i32_1 = arith.constant 0 : i32
    return %c0_i32, %c0_i32_0 : i32, i32
  }
  func.func @transform_3(%arg0: i32) -> (i32, i32) {
    %c0_i32 = arith.constant 0 : i32
    %c0_i32_0 = arith.constant 0 : i32
    %c0_i32_1 = arith.constant 0 : i32
    return %c0_i32, %c0_i32_0 : i32, i32
  }
  func.func @transform_4(%arg0: i32) -> (i32, i32) {
    %c0_i32 = arith.constant 0 : i32
    %c0_i32_0 = arith.constant 0 : i32
    %c0_i32_1 = arith.constant 0 : i32
    return %c0_i32, %c0_i32_0 : i32, i32
  }
  func.func @transform_5(%arg0: i32) -> (i32, i32) {
    %c0_i32 = arith.constant 0 : i32
    %c0_i32_0 = arith.constant 0 : i32
    %c0_i32_1 = arith.constant 0 : i32
    return %c0_i32, %c0_i32_0 : i32, i32
  }
  func.func @transform_6(%arg0: i32) -> (i32, i32) {
    %c0_i32 = arith.constant 0 : i32
    %c0_i32_0 = arith.constant 0 : i32
    %c0_i32_1 = arith.constant 0 : i32
    return %c0_i32, %c0_i32_0 : i32, i32
  }
  func.func @transform_7(%arg0: i32) -> (i32, i32) {
    %c0_i32 = arith.constant 0 : i32
    %c0_i32_0 = arith.constant 0 : i32
    %c0_i32_1 = arith.constant 0 : i32
    return %c0_i32, %c0_i32_0 : i32, i32
  }
  func.func @transform_8(%arg0: i32) -> (i32, i32) {
    %c0_i32 = arith.constant 0 : i32
    %c0_i32_0 = arith.constant 0 : i32
    %c0_i32_1 = arith.constant 0 : i32
    return %c0_i32, %c0_i32_0 : i32, i32
  }
  func.func @transform_9(%arg0: i32) -> (i32, i32) {
    %c0_i32 = arith.constant 0 : i32
    %c0_i32_0 = arith.constant 0 : i32
    %c0_i32_1 = arith.constant 0 : i32
    return %c0_i32, %c0_i32_0 : i32, i32
  }
  func.func @transform_10(%arg0: i32) -> (i32, i32) {
    %c0_i32 = arith.constant 0 : i32
    %c0_i32_0 = arith.constant 0 : i32
    %c0_i32_1 = arith.constant 0 : i32
    return %c0_i32, %c0_i32_0 : i32, i32
  }
  func.func @transform_11(%arg0: i32) -> (i32, i32) {
    %c0_i32 = arith.constant 0 : i32
    %c0_i32_0 = arith.constant 0 : i32
    %c0_i32_1 = arith.constant 0 : i32
    return %c0_i32, %c0_i32_0 : i32, i32
  }
  func.func @transform_12(%arg0: i32) -> (i32, i32) {
    %c0_i32 = arith.constant 0 : i32
    %c0_i32_0 = arith.constant 0 : i32
    %c0_i32_1 = arith.constant 0 : i32
    return %c0_i32, %c0_i32_0 : i32, i32
  }
  func.func @transform_13(%arg0: i32) -> (i32, i32) {
    %c0_i32 = arith.constant 0 : i32
    %c0_i32_0 = arith.constant 0 : i32
    %c0_i32_1 = arith.constant 0 : i32
    return %c0_i32, %c0_i32_0 : i32, i32
  }
  func.func @transform_14(%arg0: i32) -> (i32, i32) {
    %c0_i32 = arith.constant 0 : i32
    %c0_i32_0 = arith.constant 0 : i32
    %c0_i32_1 = arith.constant 0 : i32
    return %c0_i32, %c0_i32_0 : i32, i32
  }
  func.func @transform_15(%arg0: i32) -> (i32, i32) {
    %c0_i32 = arith.constant 0 : i32
    %c0_i32_0 = arith.constant 0 : i32
    return %arg0, %c0_i32 : i32, i32
  }
}

</mosaic_0001>

<bundles_post_ra>
// kernel: linear_ae_forward.1
= control target key start
LH: loop header
LB: loop body
LE: loop exit
PB: predicated region body
PF: predicated region fallthrough
CT: control target
= control target key end

     0   :  { %v60_v27 = vlaneseq  ;;  %v2215_v35 = vmov 1983009808   ;;  %v2216_v40 = vmov 0.0   ;;  %vm2217_vm0 = vmmov 0   ;;  %s2759_s0 = inlined_call_operand.vmem [shape: f32[2,784], index: 0, kind: input, shape index: {}]   ;;  %s2760_s1 = inlined_call_operand.vmem [shape: bf16[784,128], index: 1, kind: input, shape index: {}]   ;;  %s2761_s2 = inlined_call_operand.vmem [shape: f32[1,128], index: 2, kind: input, shape index: {}]   ;;  %s2762_s3 = inlined_call_operand.vmem [shape: bf16[128,64], index: 3, kind: input, shape index: {}]   ;;  %s2763_s4 = inlined_call_operand.vmem [shape: f32[1,64], index: 4, kind: input, shape index: {}]   ;;  %s2764_s5 = inlined_call_operand.vmem [shape: bf16[64,12], index: 5, kind: input, shape index: {}]   ;;  %s2765_s6 = inlined_call_operand.vmem [shape: f32[1,12], index: 6, kind: input, shape index: {}]   ;;  %s2766_s7 = inlined_call_operand.vmem [shape: bf16[12,12], index: 7, kind: input, shape index: {}]   ;;  %s2767_s8 = inlined_call_operand.vmem [shape: f32[1,12], index: 8, kind: input, shape index: {}]   ;;  %s2768_s9 = inlined_call_operand.vmem [shape: bf16[12,64], index: 9, kind: input, shape index: {}]   ;;  %s2769_s10 = inlined_call_operand.vmem [shape: f32[1,64], index: 10, kind: input, shape index: {}]   ;;  %s2770_s11 = inlined_call_operand.vmem [shape: bf16[64,128], index: 11, kind: input, shape index: {}]   ;;  %s2771_s12 = inlined_call_operand.vmem [shape: f32[1,128], index: 12, kind: input, shape index: {}]   ;;  %s2772_s13 = inlined_call_operand.vmem [shape: bf16[128,784], index: 13, kind: input, shape index: {}]   ;;  %s2773_s14 = inlined_call_operand.vmem [shape: f32[1,784], index: 14, kind: input, shape index: {}]   ;;  %s2774_s15 = inlined_call_operand.hbm [shape: bf16[2,784], index: 15, kind: output, shape index: {}]  }
   0x1   :  { %v2044_v0 = vld [vmem:[%s2760_s1 + $0x78] sm:$0xff]   ;;  %v2048_v4 = vld [vmem:[%s2760_s1 + $0x70] sm:$0xff]   ;;  %v2052_v8 = vld [vmem:[%s2760_s1 + $0x68] sm:$0xff]   ;;  %v58_v36 = vunpack.c.l.s4 %v2215_v35  ;;  %vm502_vm1 = vcmask 130048  }
   0x2   :  { %v2045_v1 = vld [vmem:[%s2760_s1 + $0x38] sm:$0xff]   ;;  %1856 = vmatprep.subr.bf16.mxu0 %v2044_v0  ;;  %v2049_v5 = vld [vmem:[%s2760_s1 + $0x30] sm:$0xff]   ;;  %v2053_v9 = vld [vmem:[%s2760_s1 + $0x28] sm:$0xff]   ;;  %v2394_v32 = vshrl.u32 %v60_v27, 7 }
   0x3   :  { %v2046_v2 = vld [vmem:[%s2760_s1 + $0xf8] sm:$0xff]   ;;  %1857 = vmatpush3.bf16.msra.mxu0 %v2045_v1  ;;  %v2050_v6 = vld [vmem:[%s2760_s1 + $0xf0] sm:$0xff]   ;;  %v2054_v10 = vld [vmem:[%s2760_s1 + $0xe8] sm:$0xff]   ;;  %v59_v38 = vunpack.c.0.s8 %v58_v36 }
   0x4   :  { %v2047_v3 = vld [vmem:[%s2760_s1 + $0xb8] sm:$0xff]   ;;  %1878 = vmatprep.subr.bf16.mxu1 %v2046_v2  ;;  %1858 = vmatprep.subr.bf16.mxu0 %v2048_v4  ;;  %v2051_v7 = vld [vmem:[%s2760_s1 + $0xb0] sm:$0xff]   ;;  %v2055_v11 = vld [vmem:[%s2760_s1 + $0xa8] sm:$0xff]  }
   0x5   :  { %1879 = vmatpush3.bf16.msra.mxu1 %v2047_v3  ;;  %v2056_v12 = vld [vmem:[%s2760_s1 + $0x60] sm:$0xff]   ;;  %v2060_v16 = vld [vmem:[%s2760_s1 + $0x58] sm:$0xff]   ;;  %v2064_v20 = vld [vmem:[%s2760_s1 + $0x50] sm:$0xff]   ;;  %v62_v41 = vsub.s32 %v59_v38, %v2394_v32 }
   0x6   :  { %1880 = vmatprep.subr.bf16.mxu1 %v2050_v6  ;;  %v2057_v13 = vld [vmem:[%s2760_s1 + $0x20] sm:$0xff]   ;;  %v2061_v17 = vld [vmem:[%s2760_s1 + $0x18] sm:$0xff]   ;;  %v2065_v21 = vld [vmem:[%s2760_s1 + $0x10] sm:$0xff]  }
   0x7   :  { %1859 = vmatpush3.bf16.msra.mxu0 %v2049_v5  ;;  %v2058_v14 = vld [vmem:[%s2760_s1 + $0xe0] sm:$0xff]   ;;  %v2062_v18 = vld [vmem:[%s2760_s1 + $0xd8] sm:$0xff]   ;;  %v2066_v22 = vld [vmem:[%s2760_s1 + $0xd0] sm:$0xff]  }
   0x8   :  { %1860 = vmatprep.subr.bf16.mxu0 %v2052_v8  ;;  %v2059_v15 = vld [vmem:[%s2760_s1 + $0xa0] sm:$0xff]   ;;  %v2063_v19 = vld [vmem:[%s2760_s1 + $0x98] sm:$0xff]   ;;  %v2067_v23 = vld [vmem:[%s2760_s1 + $0x90] sm:$0xff]  }
   0x9   :  { %1881 = vmatpush3.bf16.msra.mxu1 %v2051_v7  ;;  %v2068_v24 = vld [vmem:[%s2760_s1 + $0x48] sm:$0xff]   ;;  %v2072_v29 = vld [vmem:[%s2760_s1 + $0x40] sm:$0xff]   ;;  %v2076_v37 = vld [vmem:[%s2760_s1 + $0x178] sm:$0xff]  }
   0xa   :  { %1882 = vmatprep.subr.bf16.mxu1 %v2054_v10  ;;  %v2069_v25 = vld [vmem:[%s2760_s1 + $0x8] sm:$0xff]   ;;  %v2073_v30 = vld [vmem:[%s2760_s1] sm:$0xff]   ;;  %v2078_v50 = vld [vmem:[%s2760_s1 + $0x138] sm:$0xff]  }
   0xb   :  { %1861 = vmatpush3.bf16.msra.mxu0 %v2053_v9  ;;  %v2070_v26 = vld [vmem:[%s2760_s1 + $0xc8] sm:$0xff]   ;;  %v2074_v31 = vld [vmem:[%s2760_s1 + $0xc0] sm:$0xff]   ;;  %v2079_v51 = vld [vmem:[%s2760_s1 + $0x170] sm:$0xff]  }
   0xc   :  { %1862 = vmatprep.subr.bf16.mxu0 %v2056_v12  ;;  %v2071_v28 = vld [vmem:[%s2760_s1 + $0x88] sm:$0xff]   ;;  %v52_v33 = vld [vmem:[%s2759_s0] sm:$0xff]  ;;  %v2080_v52 = vld [vmem:[%s2760_s1 + $0x130] sm:$0xff]  }
   0xd   :  { %1883 = vmatpush3.bf16.msra.mxu1 %v2055_v11  ;;  %v2075_v34 = vld [vmem:[%s2760_s1 + $0x80] sm:$0xff]   ;;  %v56_v39 = vcombine.high %v52_v33, %v52_v33  ;;  %v63_v42 = vrot.slane %v52_v33, %v62_v41  ;;  %v2081_v53 = vld [vmem:[%s2760_s1 + $0x168] sm:$0xff]   ;;  %v2085_v63 = vld [vmem:[%s2760_s1 + $0x158] sm:$0xff]  }
   0xe   :  { %1884 = vmatprep.subr.bf16.mxu1 %v2058_v14  ;;  %v2082_v54 = vld [vmem:[%s2760_s1 + $0x128] sm:$0xff]   ;;  %v2083_v55 = vld [vmem:[%s2760_s1 + $0x160] sm:$0xff]   ;;  %v2086_v2 = vld [vmem:[%s2760_s1 + $0x118] sm:$0xff]  }
   0xf   :  { %1863 = vmatpush3.bf16.msra.mxu0 %v2057_v13  ;;  %v70_v43 = vrot.slane %v56_v39, %v62_v41  ;;  %v71_v44 = vcombine.high %v63_v42, %v63_v42  ;;  %v96_v46 = vpack.c.bf16 %v63_v42, %v63_v42  ;;  %v2093_v56 = vld [vmem:[%s2760_s1 + $0x180] sm:$0xff]   ;;  %v53_v57 = vld [vmem:[%s2759_s0 + $0x8] sm:$0x3f]  ;;  %v2087_v3 = vld [vmem:[%s2760_s1 + $0x150] sm:$0xff]  }
  0x10   :  { %1864 = vmatprep.subr.bf16.mxu0 %v2060_v16  ;;  %v73_v58 = vcombine.high %v53_v57, %v53_v57  ;;  %v80_v59 = vrot.slane %v53_v57, %v62_v41  ;;  %v2084_v60 = vld [vmem:[%s2760_s1 + $0x120] sm:$0xff]   ;;  %v2088_v4 = vld [vmem:[%s2760_s1 + $0x110] sm:$0xff]   ;;  %v2089_v5 = vld [vmem:[%s2760_s1 + $0x148] sm:$0xff]  }
  0x11   :  { %1885 = vmatpush3.bf16.msra.mxu1 %v2059_v15  ;;  %v72_v45 = vcombine.high %v70_v43, %v70_v43  ;;  %v98_v47 = vpack.c.bf16 %v70_v43, %v70_v43  ;;  %v97_v48 = vpack.c.bf16 %v71_v44, %v71_v44  ;;  %v2090_v6 = vld [vmem:[%s2760_s1 + $0x108] sm:$0xff]   ;;  %v2091_v7 = vld [vmem:[%s2760_s1 + $0x140] sm:$0xff]  }
  0x12   :  { %1886 = vmatprep.subr.bf16.mxu1 %v2062_v18  ;;  %v87_v61 = vrot.slane %v73_v58, %v62_v41  ;;  %v88_v62 = vcombine.high %v80_v59, %v80_v59  ;;  %v2092_v8 = vld [vmem:[%s2760_s1 + $0x100] sm:$0xff]   ;;  %v100_v9 = vpack.c.bf16 %v80_v59, %v80_v59 }
  0x13   :  { %1865 = vmatpush3.bf16.msra.mxu0 %v2061_v17  ;;  %v99_v49 = vpack.c.bf16 %v72_v45, %v72_v45  ;;  %538 = vmatprep.mubr.bf16.mxu0 %v97_v48 }
  0x14   :  { %1866 = vmatprep.subr.bf16.mxu0 %v2064_v20  ;;  %v101_v0 = vpack.c.bf16 %v88_v62, %v88_v62  ;;  %v102_v1 = vpack.c.bf16 %v87_v61, %v87_v61 }
  0x15   :  { %1887 = vmatpush3.bf16.msra.mxu1 %v2063_v19  ;;  %578 = vmatprep.mubr.bf16.mxu1 %v99_v49 }
  0x16   :  { %1888 = vmatprep.subr.bf16.mxu1 %v2066_v22 }
  0x17   :  { %1867 = vmatpush3.bf16.msra.mxu0 %v2065_v21 }
  0x18   :  { %1868 = vmatprep.subr.bf16.mxu0 %v2068_v24 }
  0x19   :  { %1889 = vmatpush3.bf16.msra.mxu1 %v2067_v23 }
  0x1a   :  { %1890 = vmatprep.subr.bf16.mxu1 %v2070_v26 }
  0x1b   :  { %1869 = vmatpush3.bf16.msra.mxu0 %v2069_v25 }
  0x1c   :  { %1870 = vmatprep.subr.bf16.mxu0 %v2072_v29 }
  0x1d   :  { %1891 = vmatpush3.bf16.msra.mxu1 %v2071_v28 }
  0x1e   :  { %1892 = vmatprep.subr.bf16.mxu1 %v2074_v31 }
  0x1f   :  { %1871 = vmatpush3.bf16.msra.mxu0 %v2073_v30 }
  0x20   :  { %1900 = vmatprep.subr.bf16.mxu0 %v2076_v37 }
  0x21   :  { %1893 = vmatpush3.bf16.msra.mxu1 %v2075_v34 }
  0x22   :  { %1956 = vmatprep.subr.bf16.mxu1 %v2216_v40  ;;  %539 = vmatmul.mubr.bf16.vlgmr.msra.gmra.mxu0 %v96_v46 }
  0x23   :  { %1901 = vmatpush3.bf16.msra.mxu0 %v2078_v50  ;;  %618 = vmatprep.mubr.bf16.mxu0 %v101_v0 }
  0x24   :  { %579 = vmatmul.mubr.bf16.vlgmr.msra.gmra.mxu1 %v98_v47  ;;  %1902 = vmatprep.subr.bf16.mxu0 %v2079_v51 }
  0x25   :  { %1958 = vmatprep.mubr.msk.bf16.mxu1 %vm2217_vm0, %v2216_v40  ;;  %1957 = vmatpush3.bf16.msra.mxu1 %v2093_v56 }
  0x26   :  { %1962 = vmatprep.subr.bf16.mxu1 %v2216_v40 }
  0x27   :  { %1903 = vmatpush3.bf16.msra.mxu0 %v2080_v52 }
  0x28   :  { %1904 = vmatprep.subr.bf16.mxu0 %v2081_v53 }
  0x2b   :  { %1905 = vmatpush3.bf16.msra.mxu0 %v2082_v54 }
  0x2c   :  { %1906 = vmatprep.subr.bf16.mxu0 %v2083_v55  ;;  %1959 = vmatmul.mubr.msk.bf16.vlgmr.msra.gmra.mxu1 %vm502_vm1, %v102_v1 }
  0x2d   :  { %1978 = vmatprep.mubr.msk.bf16.mxu1 %vm2217_vm0, %v2216_v40 }
  0x2f   :  { %1907 = vmatpush3.bf16.msra.mxu0 %v2084_v60 }
  0x30   :  { %1908 = vmatprep.subr.bf16.mxu0 %v2085_v63 }
  0x33   :  { %1909 = vmatpush3.bf16.msra.mxu0 %v2086_v2 }
  0x34   :  { %1910 = vmatprep.subr.bf16.mxu0 %v2087_v3 }
  0x37   :  { %1911 = vmatpush3.bf16.msra.mxu0 %v2088_v4 }
  0x38   :  { %1912 = vmatprep.subr.bf16.mxu0 %v2089_v5 }
  0x3b   :  { %1913 = vmatpush3.bf16.msra.mxu0 %v2090_v6 }
  0x3c   :  { %1914 = vmatprep.subr.bf16.mxu0 %v2091_v7 }
  0x3f   :  { %1915 = vmatpush3.bf16.msra.mxu0 %v2092_v8 }
  0x40   :  { %1982 = vmatprep.subr.bf16.mxu0 %v2216_v40 }
  0x42   :  { %619 = vmatmul.mubr.bf16.vlgmr.msra.gmra.mxu0 %v100_v9 }
  0x43   :  { %1990 = vmatprep.mubr.msk.bf16.mxu0 %vm2217_vm0, %v2216_v40 }
  0x44   :  { %20 = vsyncpa [#allocation3], 0  ;;  %v2095_v10 = vld [vmem:[%s2762_s3 + $0x38] sm:$0xff]   ;;  %v2096_v11 = vld [vmem:[%s2762_s3 + $0x30] sm:$0xff]   ;;  %vm884_vm2 = vcmask 1045504   ;;  %vm820_vm3 = vcmask 523264  }
  0x45   :  { %1963 = vmatpush3.bf16.msra.mxu1 %v2095_v10  ;;  %v2097_v12 = vld [vmem:[%s2762_s3 + $0x28] sm:$0xff]   ;;  %v2098_v13 = vld [vmem:[%s2762_s3 + $0x20] sm:$0xff]   ;;  %v2099_v14 = vld [vmem:[%s2762_s3 + $0x18] sm:$0xff]   ;;  %vm880_vm4 = vcmask 97280   ;;  %vm1691_vm5 = vcmask 1040384   ;;  %vm1692_vm6 = vcmask 1041409  }
  0x46   :  { %1964 = vmatprep.subr.bf16.mxu1 %v2216_v40  ;;  %v2100_v15 = vld [vmem:[%s2762_s3 + $0x10] sm:$0xff]   ;;  %v2101_v16 = vld [vmem:[%s2762_s3 + $0x8] sm:$0xff]   ;;  %v2102_v17 = vld [vmem:[%s2762_s3] sm:$0xff]   ;;  %vm1694_vm8 = vcmask 1042434   ;;  %vm1696_vm10 = vcmask 1043459   ;;  %vm1698_vm11 = vcmask 1044484  }
  0x47   :  { %v2103_v18 = vld [vmem:[%s2764_s5 + $0x18] sm:$0xff]   ;;  %v2104_v19 = vld [vmem:[%s2764_s5 + $0x10] sm:$0xff]   ;;  %v1719_v34 = vld [vmem:[%s2761_s2] ss:$0 sm:$0xff]  ;;  %vm1700_vm14 = vcmask 1045509  }
  0x48   :  { %1983 = vmatpush3.bf16.msra.mxu0 %v2103_v18  ;;  %v2105_v48 = vld [vmem:[%s2764_s5 + $0x8] sm:$0xff]   ;;  %v2106_v49 = vld [vmem:[%s2764_s5] sm:$0xff]   ;;  %v2109_v6 = vld [vmem:[%s2770_s11 + $0x18] sm:$0xff]  }
  0x49   :  { %1965 = vmatpush3.bf16.msra.mxu1 %v2096_v11  ;;  %1984 = vmatprep.subr.bf16.mxu0 %v2216_v40  ;;  %v2107_v50 = vld [vmem:[%s2766_s7] sm:$0x3f]   ;;  %v2110_v7 = vld [vmem:[%s2770_s11 + $0x10] sm:$0xff]   ;;  %vm1693_vm7 = vmor %vm1692_vm6, %vm1691_vm5 }
  0x4a   :  { %1966 = vmatprep.subr.bf16.mxu1 %v2216_v40  ;;  %v886_v51 = vsel %vm884_vm2, %v2107_v50, 0  ;;  %v1770_v52 = vld [vmem:[%s2763_s4] ss:$0 sm:$0xff]  ;;  %v2113_v18 = vld [vmem:[%s2772_s13 + $0x188] ss:$28 sps:$4 sm:$0xff]   ;;  %vm1695_vm9 = vmor %vm1694_vm8, %vm1693_vm7 }
  0x4b   :  { %v2108_v60 = vld [vmem:[%s2768_s9] sm:$0x3f]   ;;  %v2142_v50 = vld [vmem:[%s2772_s13 + $0xb4] ss:$28 sps:$4 sm:$0xff]   ;;  %vm1697_vm12 = vmor %vm1696_vm10, %vm1695_vm9 }
  0x4c   :  { %1985 = vmatpush3.bf16.msra.mxu0 %v2104_v19  ;;  %v948_v61 = vsel %vm884_vm2, %v2108_v60, 0  ;;  %v1779_v62 = vld [vmem:[%s2765_s6] ss:$0 sm:$0xff]  ;;  %v2115_v19 = vld [vmem:[%s2772_s13 + $0x18c] ss:$28 sps:$4 sm:$0xff]   ;;  %vm1699_vm13 = vmor %vm1698_vm11, %vm1697_vm12 }
  0x4d   :  { %1967 = vmatpush3.bf16.msra.mxu1 %v2097_v12  ;;  %1986 = vmatprep.subr.bf16.mxu0 %v2216_v40  ;;  %v1785_v8 = vld [vmem:[%s2767_s8] ss:$0 sm:$0xff]  ;;  %v2163_v60 = vld [vmem:[%s2772_s13 + $0x19c] ss:$28 sps:$4 sm:$0xff]   ;;  %vm1701_vm15 = vmor %vm1700_vm14, %vm1699_vm13 }
  0x4e   :  { %1968 = vmatprep.subr.bf16.mxu1 %v2216_v40 }
  0x50   :  { %1987 = vmatpush3.bf16.msra.mxu0 %v2105_v48  ;;  %v2136_v48 = vld [vmem:[%s2772_s13 + $0xec] ss:$28 sps:$4 sm:$0xff]  }
  0x51   :  { %1969 = vmatpush3.bf16.msra.mxu1 %v2098_v13  ;;  %1988 = vmatprep.subr.bf16.mxu0 %v2216_v40 }
  0x52   :  { %1970 = vmatprep.subr.bf16.mxu1 %v2216_v40 }
  0x54   :  { %1989 = vmatpush3.bf16.msra.mxu0 %v2106_v49  ;;  %v2134_v49 = vld [vmem:[%s2772_s13 + $0xe8] ss:$28 sps:$4 sm:$0xff]  }
  0x55   :  { %1971 = vmatpush3.bf16.msra.mxu1 %v2099_v14  ;;  %2000 = vmatprep.subr.bf16.mxu0 %v2216_v40 }
  0x56   :  { %1972 = vmatprep.subr.bf16.mxu1 %v2216_v40 }
  0x59   :  { %1973 = vmatpush3.bf16.msra.mxu1 %v2100_v15 }
  0x5a   :  { %1974 = vmatprep.subr.bf16.mxu1 %v2216_v40 }
  0x5d   :  { %1975 = vmatpush3.bf16.msra.mxu1 %v2101_v16  ;;  %v2111_v16 = vld [vmem:[%s2770_s11 + $0x8] sm:$0xff]  }
  0x5e   :  { %1976 = vmatprep.subr.bf16.mxu1 %v2216_v40 }
  0x61   :  { %1977 = vmatpush3.bf16.msra.mxu1 %v2102_v17  ;;  %v2112_v17 = vld [vmem:[%s2770_s11] sm:$0xff]  }
  0x62   :  { %1994 = vmatprep.subr.bf16.mxu1 %v2216_v40 }
  0xe2   :  { %v1872_v20 = vpop.f32.mrf.mxu0 }
  0xe4   :  { %v1894_v21 = vpop.f32.mrf.mxu1  ;;  %v1873_v22 = vpop.f32.mrf.mxu0 }
  0xe5   :  { %v1874_v33 = vadd.f32 %v1873_v22, %v1872_v20  ;;  %v2118_v20 = vld [vmem:[%s2772_s13 + $0x194] ss:$28 sps:$4 sm:$0xff]  }
  0xe6   :  { %v1895_v23 = vpop.f32.mrf.mxu1  ;;  %v1875_v24 = vpop.f32.mrf.mxu0  ;;  %v2119_v22 = vld [vmem:[%s2772_s13 + $0x150] ss:$28 sps:$4 sm:$0xff]  }
  0xe7   :  { %v541_v35 = vadd.f32 %v1874_v33, %v1719_v34  ;;  %v1896_v36 = vadd.f32 %v1895_v23, %v1894_v21  ;;  %v2121_v21 = vld [vmem:[%s2772_s13 + $0x154] ss:$28 sps:$4 sm:$0xff]   ;;  %v2127_v23 = vld [vmem:[%s2772_s13 + $0x11c] ss:$28 sps:$4 sm:$0xff]   ;;  %v1788_v34 = vld [vmem:[%s2769_s10] ss:$0 sm:$0xff] }
  0xe8   :  { %v1897_v25 = vpop.f32.mrf.mxu1  ;;  %v1876_v26 = vpop.f32.mrf.mxu0  ;;  %v2125_v24 = vld [vmem:[%s2772_s13 + $0x118] ss:$28 sps:$4 sm:$0xff]  }
  0xe9   :  { %v581_v39 = vadd.f32 %v1896_v36, %v541_v35  ;;  %v2133_v25 = vld [vmem:[%s2772_s13 + $0xe4] ss:$28 sps:$4 sm:$0xff]   ;;  %v2149_v33 = vld [vmem:[%s2772_s13 + $0x38] ss:$28 sps:$4 sm:$0xff]  }
  0xea   :  { %v1898_v27 = vpop.f32.mrf.mxu1  ;;  %v2131_v26 = vld [vmem:[%s2772_s13 + $0xe0] ss:$28 sps:$4 sm:$0xff]  }
  0xeb   :  { %v2139_v27 = vld [vmem:[%s2772_s13 + $0xac] ss:$28 sps:$4 sm:$0xff]  }
  0xec   :  { %v660_v28 = vpop.f32.mrf.mxu1 }
  0xee   :  { %v1960_v29 = vpop.f32.mrf.mxu1 }
  0xef   :  { %v2145_v29 = vld [vmem:[%s2772_s13 + $0x74] ss:$28 sps:$4 sm:$0xff]  }
  0xf0   :  { %v663_v30 = vpop.f32.mrf.mxu1 }
  0xf1   :  { %v2143_v30 = vld [vmem:[%s2772_s13 + $0x70] ss:$28 sps:$4 sm:$0xff]  }
  0xf2   :  { %v1961_v31 = vpop.f32.mrf.mxu1 }
  0xf3   :  { %v2151_v31 = vld [vmem:[%s2772_s13 + $0x3c] ss:$28 sps:$4 sm:$0xff]  }
 0x102   :  { %v1916_v37 = vpop.f32.mrf.mxu0 }
 0x104   :  { %v1917_v38 = vpop.f32.mrf.mxu0 }
 0x105   :  { %v1918_v41 = vadd.f32 %v1917_v38, %v1916_v37 }
 0x106   :  { %v1919_v42 = vpop.f32.mrf.mxu0 }
 0x107   :  { %v621_v43 = vadd.f32 %v1918_v41, %v581_v39  ;;  %v2116_v41 = vld [vmem:[%s2772_s13 + $0x190] ss:$28 sps:$4 sm:$0xff]  }
 0x108   :  { %v1920_v44 = vpop.f32.mrf.mxu0 }
 0x109   :  { %v661_v45 = vadd.f32 %v660_v28, %v621_v43  ;;  %v2137_v28 = vld [vmem:[%s2772_s13 + $0xa8] ss:$28 sps:$4 sm:$0xff]   ;;  %v2124_v43 = vld [vmem:[%s2772_s13 + $0x15c] ss:$28 sps:$4 sm:$0xff]  }
 0x10b   :  { %v666_v46 = vmax.f32 %v661_v45, 0.0  ;;  %v2122_v45 = vld [vmem:[%s2772_s13 + $0x158] ss:$28 sps:$4 sm:$0xff]  }
 0x10d   :  { %v667_v47 = vpack.c.bf16 %v666_v46, %v666_v46  ;;  %v2130_v46 = vld [vmem:[%s2772_s13 + $0x124] ss:$28 sps:$4 sm:$0xff]  }
 0x10f   :  { %1979 = vmatmul.mubr.bf16.vlgmr.msra.gmra.mxu1 %v667_v47  ;;  %v2128_v47 = vld [vmem:[%s2772_s13 + $0x120] ss:$28 sps:$4 sm:$0xff]  }
 0x110   :  { %1996 = vmatprep.mubr.msk.bf16.mxu1 %vm2217_vm0, %v2216_v40  ;;  %1995 = vmatpush3.bf16.msra.mxu1 %v886_v51  ;;  %v2140_v51 = vld [vmem:[%s2772_s13 + $0xb0] ss:$28 sps:$4 sm:$0xff]  }
 0x111   :  { %2006 = vmatprep.subr.bf16.mxu1 %v2216_v40 }
 0x1cf   :  { %v773_v53 = vpop.f32.mrf.mxu1 }
 0x1d0   :  { %v774_v54 = vadd.f32 %v1770_v52, %v773_v53  ;;  %v2148_v52 = vld [vmem:[%s2772_s13 + $0x7c] ss:$28 sps:$4 sm:$0xff]  }
 0x1d1   :  { %v1980_v55 = vpop.f32.mrf.mxu1  ;;  %v2146_v53 = vld [vmem:[%s2772_s13 + $0x78] ss:$28 sps:$4 sm:$0xff]  }
 0x1d2   :  { %v779_v56 = vmax.f32 %v774_v54, 0.0  ;;  %v2154_v54 = vld [vmem:[%s2772_s13 + $0x44] ss:$28 sps:$4 sm:$0xff]  }
 0x1d3   :  { %v776_v57 = vpop.f32.mrf.mxu1  ;;  %v2152_v55 = vld [vmem:[%s2772_s13 + $0x40] ss:$28 sps:$4 sm:$0xff]  }
 0x1d4   :  { %v780_v58 = vpack.c.bf16 %v779_v56, %v779_v56  ;;  %v2157_v56 = vld [vmem:[%s2772_s13 + $0x4] ss:$28 sps:$4 sm:$0xff]   ;;  %v2160_v57 = vld [vmem:[%s2772_s13 + $0xc] ss:$28 sps:$4 sm:$0xff]  }
 0x1d5   :  { %v1981_v59 = vpop.f32.mrf.mxu1 }
 0x1d6   :  { %1991 = vmatmul.mubr.msk.bf16.vlgmr.msra.gmra.mxu0 %vm820_vm3, %v780_v58  ;;  %v2155_v58 = vld [vmem:[%s2772_s13] ss:$28 sps:$4 sm:$0xff]   ;;  %v2158_v59 = vld [vmem:[%s2772_s13 + $0x8] ss:$28 sps:$4 sm:$0xff]  }
 0x1d7   :  { %2002 = vmatprep.mubr.msk.bf16.mxu0 %vm2217_vm0, %v2216_v40  ;;  %2001 = vmatpush3.bf16.msra.mxu0 %v948_v61  ;;  %v2218_v61 = vmov 0  }
 0x1d8   :  { %1465 = vmatprep.subr.bf16.mxu0 %v2115_v19  ;;  %v2180_v19 = vld [vmem:[%s2772_s13 + $0xc0] ss:$28 sps:$4 sm:$0xff]  }
 0x296   :  { %v858_v63 = vpop.f32.mrf.mxu0 }
 0x297   :  { %v859_v0 = vadd.f32 %v1779_v62, %v858_v63  ;;  %v1791_v62 = vld [vmem:[%s2771_s12] ss:$0 sm:$0xff] }
 0x298   :  { %v1992_v1 = vpop.f32.mrf.mxu0 }
 0x299   :  { %v864_v2 = vmax.f32 %v859_v0, 0.0 }
 0x29a   :  { %v861_v3 = vpop.f32.mrf.mxu0 }
 0x29b   :  { %v865_v4 = vpack.c.bf16 %v864_v2, %v864_v2 }
 0x29c   :  { %v1993_v5 = vpop.f32.mrf.mxu0 }
 0x29d   :  { %1997 = vmatmul.mubr.msk.bf16.vlgmr.msra.gmra.mxu1 %vm880_vm4, %v865_v4  ;;  %v2161_v4 = vld [vmem:[%s2772_s13 + $0x198] ss:$28 sps:$4 sm:$0xff]   ;;  %v2164_v5 = vld [vmem:[%s2772_s13 + $0x1a0] ss:$28 sps:$4 sm:$0xff]  }
 0x29e   :  { %2014 = vmatprep.mubr.msk.bf16.mxu1 %vm2217_vm0, %v2216_v40  ;;  %2007 = vmatpush3.bf16.msra.mxu1 %v2109_v6 }
 0x29f   :  { %2008 = vmatprep.subr.bf16.mxu1 %v2216_v40 }
 0x2a2   :  { %2009 = vmatpush3.bf16.msra.mxu1 %v2110_v7  ;;  %v2167_v7 = vld [vmem:[%s2772_s13 + $0x164] ss:$28 sps:$4 sm:$0xff]  }
 0x2a3   :  { %2010 = vmatprep.subr.bf16.mxu1 %v2216_v40 }
 0x2a6   :  { %2011 = vmatpush3.bf16.msra.mxu1 %v2111_v16  ;;  %v2176_v16 = vld [vmem:[%s2772_s13 + $0xf8] ss:$28 sps:$4 sm:$0xff]  }
 0x2a7   :  { %2012 = vmatprep.subr.bf16.mxu1 %v2216_v40 }
 0x2aa   :  { %2013 = vmatpush3.bf16.msra.mxu1 %v2112_v17  ;;  %v2179_v17 = vld [vmem:[%s2772_s13 + $0xbc] ss:$28 sps:$4 sm:$0xff]  }
 0x2ab   :  { %1506 = vmatprep.subr.bf16.mxu1 %v2118_v20  ;;  %v2183_v20 = vld [vmem:[%s2772_s13 + $0x84] ss:$28 sps:$4 sm:$0xff]  }
 0x35d   :  { %v922_v9 = vpop.f32.mrf.mxu1 }
 0x35e   :  { %v923_v10 = vadd.f32 %v1785_v8, %v922_v9  ;;  %v2165_v9 = vld [vmem:[%s2772_s13 + $0x160] ss:$28 sps:$4 sm:$0xff]  }
 0x35f   :  { %v1998_v11 = vpop.f32.mrf.mxu1 }
 0x360   :  { %v928_v12 = vmax.f32 %v923_v10, 0.0  ;;  %v2168_v10 = vld [vmem:[%s2772_s13 + $0x168] ss:$28 sps:$4 sm:$0xff]  }
 0x361   :  { %v925_v13 = vpop.f32.mrf.mxu1  ;;  %v2171_v11 = vld [vmem:[%s2772_s13 + $0x12c] ss:$28 sps:$4 sm:$0xff]  }
 0x362   :  { %v929_v14 = vpack.c.bf16 %v928_v12, %v928_v12  ;;  %v2169_v12 = vld [vmem:[%s2772_s13 + $0x128] ss:$28 sps:$4 sm:$0xff]   ;;  %v2172_v13 = vld [vmem:[%s2772_s13 + $0x130] ss:$28 sps:$4 sm:$0xff]  }
 0x363   :  { %v1999_v15 = vpop.f32.mrf.mxu1 }
 0x364   :  { %2003 = vmatmul.mubr.msk.bf16.vlgmr.msra.gmra.mxu0 %vm880_vm4, %v929_v14  ;;  %v2175_v14 = vld [vmem:[%s2772_s13 + $0xf4] ss:$28 sps:$4 sm:$0xff]  }
 0x365   :  { %1466 = vmatpush1.bf16.msra.mxu0 %v2113_v18  ;;  %1497 = vmatprep.mubr.bf16.mxu0 %v2218_v61  ;;  %v2173_v15 = vld [vmem:[%s2772_s13 + $0xf0] ss:$28 sps:$4 sm:$0xff]   ;;  %v2177_v18 = vld [vmem:[%s2772_s13 + $0xb8] ss:$28 sps:$4 sm:$0xff]  }
 0x366   :  { %1467 = vmatprep.subr.bf16.mxu0 %v2121_v21  ;;  %v2181_v21 = vld [vmem:[%s2772_s13 + $0x80] ss:$28 sps:$4 sm:$0xff]  }
 0x369   :  { %1468 = vmatpush1.bf16.msra.mxu0 %v2119_v22  ;;  %v2184_v22 = vld [vmem:[%s2772_s13 + $0x88] ss:$28 sps:$4 sm:$0xff]  }
 0x36a   :  { %1469 = vmatprep.subr.bf16.mxu0 %v2127_v23  ;;  %v2187_v23 = vld [vmem:[%s2772_s13 + $0x4c] ss:$28 sps:$4 sm:$0xff]  }
 0x36d   :  { %1470 = vmatpush1.bf16.msra.mxu0 %v2125_v24  ;;  %v2185_v24 = vld [vmem:[%s2772_s13 + $0x48] ss:$28 sps:$4 sm:$0xff]  }
 0x36e   :  { %1471 = vmatprep.subr.bf16.mxu0 %v2133_v25  ;;  %v2188_v25 = vld [vmem:[%s2772_s13 + $0x50] ss:$28 sps:$4 sm:$0xff]  }
 0x371   :  { %1472 = vmatpush1.bf16.msra.mxu0 %v2131_v26  ;;  %v2191_v26 = vld [vmem:[%s2772_s13 + $0x14] ss:$28 sps:$4 sm:$0xff]  }
 0x372   :  { %1473 = vmatprep.subr.bf16.mxu0 %v2139_v27  ;;  %v2189_v27 = vld [vmem:[%s2772_s13 + $0x10] ss:$28 sps:$4 sm:$0xff]  }
 0x375   :  { %1474 = vmatpush1.bf16.msra.mxu0 %v2137_v28  ;;  %v2192_v28 = vld [vmem:[%s2772_s13 + $0x18] ss:$28 sps:$4 sm:$0xff]  }
 0x376   :  { %1475 = vmatprep.subr.bf16.mxu0 %v2145_v29 }
 0x379   :  { %1476 = vmatpush1.bf16.msra.mxu0 %v2143_v30 }
 0x37a   :  { %1477 = vmatprep.subr.bf16.mxu0 %v2151_v31 }
 0x37d   :  { %1478 = vmatpush1.bf16.msra.mxu0 %v2149_v33 }
 0x37e   :  { %1479 = vmatprep.subr.bf16.mxu0 %v2157_v56 }
 0x381   :  { %1480 = vmatpush1.bf16.msra.mxu0 %v2155_v58 }
 0x382   :  { %1547 = vmatprep.subr.bf16.mxu0 %v2163_v60 }
 0x424   :  { %v984_v35 = vpop.f32.mrf.mxu0 }
 0x425   :  { %v985_v36 = vadd.f32 %v1788_v34, %v984_v35 }
 0x426   :  { %v2004_v37 = vpop.f32.mrf.mxu0 }
 0x427   :  { %v990_v38 = vmax.f32 %v985_v36, 0.0 }
 0x428   :  { %v987_v39 = vpop.f32.mrf.mxu0 }
 0x429   :  { %v991_v42 = vpack.c.bf16 %v990_v38, %v990_v38  ;;  %v1148_v38 = vsub.s32 1, %v2394_v32  ;;  %v1156_v39 = vsub.s32 3, %v2394_v32 }
 0x42a   :  { %v2005_v44 = vpop.f32.mrf.mxu0 }
 0x42b   :  { %2015 = vmatmul.mubr.msk.bf16.vlgmr.msra.gmra.mxu1 %vm820_vm3, %v991_v42  ;;  %v1152_v42 = vsub.s32 2, %v2394_v32  ;;  %v2219_v44 = vmov 1966171168  }
 0x42c   :  { %1507 = vmatpush1.bf16.msra.mxu1 %v2116_v41  ;;  %1538 = vmatprep.mubr.bf16.mxu1 %v2218_v61  ;;  %v1144_v41 = vsub.s32 0, %v2394_v32 }
 0x42d   :  { %1508 = vmatprep.subr.bf16.mxu1 %v2124_v43 }
 0x430   :  { %1509 = vmatpush1.bf16.msra.mxu1 %v2122_v45  ;;  %v1646_v45 = vunpack.c.l.s4 %v2219_v44 }
 0x431   :  { %1510 = vmatprep.subr.bf16.mxu1 %v2130_v46 }
 0x434   :  { %1511 = vmatpush1.bf16.msra.mxu1 %v2128_v47 }
 0x435   :  { %1512 = vmatprep.subr.bf16.mxu1 %v2136_v48 }
 0x438   :  { %1513 = vmatpush1.bf16.msra.mxu1 %v2134_v49  ;;  %v1168_v49 = vsub.s32 6, %v2394_v32 }
 0x439   :  { %1514 = vmatprep.subr.bf16.mxu1 %v2142_v50 }
 0x43c   :  { %1515 = vmatpush1.bf16.msra.mxu1 %v2140_v51  ;;  %v1647_v51 = vunpack.c.0.s8 %v1646_v45 }
 0x43d   :  { %1516 = vmatprep.subr.bf16.mxu1 %v2148_v52 }
 0x440   :  { %1517 = vmatpush1.bf16.msra.mxu1 %v2146_v53  ;;  %v1160_v53 = vsub.s32 4, %v2394_v32 }
 0x441   :  { %1518 = vmatprep.subr.bf16.mxu1 %v2154_v54  ;;  %v1164_v54 = vsub.s32 5, %v2394_v32 }
 0x444   :  { %1519 = vmatpush1.bf16.msra.mxu1 %v2152_v55 }
 0x445   :  { %1520 = vmatprep.subr.bf16.mxu1 %v2160_v57 }
 0x448   :  { %1521 = vmatpush1.bf16.msra.mxu1 %v2158_v59  ;;  %v1650_v59 = vsub.s32 %v1647_v51, %v2394_v32 }
 0x449   :  { %2018 = vmatprep.subr.bf16.mxu1 %v2216_v40 }
 0x4eb   :  { %v1068_v63 = vpop.f32.mrf.mxu1 }
 0x4ec   :  { %v1069_v0 = vadd.f32 %v1791_v62, %v1068_v63 }
 0x4ed   :  { %v2016_v1 = vpop.f32.mrf.mxu1 }
 0x4ee   :  { %v1074_v2 = vmax.f32 %v1069_v0, 0.0 }
 0x4ef   :  { %v1071_v3 = vpop.f32.mrf.mxu1 }
 0x4f0   :  { %v1075_v6 = vpack.c.bf16 %v1074_v2, %v1074_v2 }
 0x4f1   :  { %v2017_v8 = vpop.f32.mrf.mxu1 }
 0x4f2   :  { %1498 = vmatmul.mubr.bf16.vlgmr.msra.gmra.mxu0 %v1075_v6  ;;  %1539 = vmatmul.mubr.bf16.vlgmr.msra.gmra.mxu1 %v1075_v6 }
 0x4f3   :  { %1548 = vmatpush1.bf16.msra.mxu0 %v2161_v4  ;;  %2019 = vmatpush3.bf16.msra.mxu1 %v2164_v5 }
 0x4f4   :  { %1549 = vmatprep.subr.bf16.mxu0 %v2167_v7  ;;  %2020 = vmatprep.subr.bf16.mxu1 %v2216_v40 }
 0x4f5   :  { %1579 = vmatprep.mubr.bf16.mxu0 %v2218_v61  ;;  %2034 = vmatprep.mubr.msk.bf16.mxu1 %vm2217_vm0, %v2216_v40  ;;  %vm1702_vm0 = vcmask 129030  }
 0x4f6   :  { %vm1703_vm1 = vmor %vm1702_vm0, %vm1701_vm15 }
 0x4f7   :  { %1550 = vmatpush1.bf16.msra.mxu0 %v2165_v9  ;;  %2021 = vmatpush3.bf16.msra.mxu1 %v2168_v10 }
 0x4f8   :  { %1551 = vmatprep.subr.bf16.mxu0 %v2171_v11  ;;  %2022 = vmatprep.subr.bf16.mxu1 %v2216_v40 }
 0x4fb   :  { %1552 = vmatpush1.bf16.msra.mxu0 %v2169_v12  ;;  %2023 = vmatpush3.bf16.msra.mxu1 %v2172_v13 }
 0x4fc   :  { %1553 = vmatprep.subr.bf16.mxu0 %v2175_v14  ;;  %2024 = vmatprep.subr.bf16.mxu1 %v2216_v40 }
 0x4ff   :  { %1554 = vmatpush1.bf16.msra.mxu0 %v2173_v15  ;;  %2025 = vmatpush3.bf16.msra.mxu1 %v2176_v16 }
 0x500   :  { %1555 = vmatprep.subr.bf16.mxu0 %v2179_v17  ;;  %2026 = vmatprep.subr.bf16.mxu1 %v2216_v40 }
 0x503   :  { %1556 = vmatpush1.bf16.msra.mxu0 %v2177_v18  ;;  %2027 = vmatpush3.bf16.msra.mxu1 %v2180_v19 }
 0x504   :  { %1557 = vmatprep.subr.bf16.mxu0 %v2183_v20  ;;  %2028 = vmatprep.subr.bf16.mxu1 %v2216_v40 }
 0x507   :  { %1558 = vmatpush1.bf16.msra.mxu0 %v2181_v21  ;;  %2029 = vmatpush3.bf16.msra.mxu1 %v2184_v22 }
 0x508   :  { %1559 = vmatprep.subr.bf16.mxu0 %v2187_v23  ;;  %2030 = vmatprep.subr.bf16.mxu1 %v2216_v40 }
 0x50b   :  { %1560 = vmatpush1.bf16.msra.mxu0 %v2185_v24  ;;  %2031 = vmatpush3.bf16.msra.mxu1 %v2188_v25 }
 0x50c   :  { %1561 = vmatprep.subr.bf16.mxu0 %v2191_v26  ;;  %2032 = vmatprep.subr.bf16.mxu1 %v2216_v40  ;;  %v1140_v40 = vld [vmem:[%s2773_s14] sm:$0x7f]  ;;  %s2220_s14 = smov [#allocation2]  }
 0x50d   :  { %v1149_v43 = vrot.slane %v1140_v40, %v1148_v38  ;;  %v1157_v46 = vrot.slane %v1140_v40, %v1156_v39  ;;  %v1145_v47 = vrot.slane %v1140_v40, %v1144_v41  ;;  %v1153_v48 = vrot.slane %v1140_v40, %v1152_v42  ;;  %s1711_s11 = sshll.u32 %s2220_s14, 4  ;;  %s1712_s11 = int_to_ptr.vmem [resolvable:$true] %s1711_s11 }
 0x50e   :  { %v1169_v57 = vrot.slane %v1140_v40, %v1168_v49  ;;  %v1161_v61 = vrot.slane %v1140_v40, %v1160_v53  ;;  %v1165_v62 = vrot.slane %v1140_v40, %v1164_v54  ;;  %s2193_s20 = scalar_lea.vmem %s1712_s11, 112  ;;  %s2197_s21 = scalar_lea.vmem %s1712_s11, 128 }
 0x50f   :  { %1562 = vmatpush1.bf16.msra.mxu0 %v2189_v27  ;;  %2033 = vmatpush3.bf16.msra.mxu1 %v2192_v28  ;;  %p2194_p0 = scmp.ne.s32.totalorder %s1712_s11, %s2193_s20  ;;  %p2198_p1 = scmp.lt.s32.totalorder %s1712_s11, %s1712_s11 }
 0x510   :  { %p2199_p2 = scmp.lt.s32.totalorder %s2197_s21, %s2193_s20 }
 0x512   :  { %1580 = vmatmul.mubr.bf16.vlgmr.msra.gmra.mxu0 %v1075_v6  ;;  %2035 = vmatmul.mubr.bf16.vlgmr.msra.gmra.mxu1 %v1075_v6  ;;  %p2200_p3 = por %p2199_p2, %p2198_p1 }
 0x514   :  { %p2201_p4 = pnand %p2200_p3, %p2194_p0 }
 0x5b2   :  { %v1499_v29 = vpop.f32.mrf.mxu0  ;;  %v1540_v30 = vpop.f32.mrf.mxu1 }
 0x5b3   :  { %v1500_v55 = vadd.f32 %v1499_v29, %v1145_v47  ;;  %v1541_v56 = vadd.f32 %v1540_v30, %v1153_v48 }
 0x5b4   :  { %v1501_v31 = vpop.f32.mrf.mxu0  ;;  %v1542_v33 = vpop.f32.mrf.mxu1 }
 0x5b5   :  { %v1502_v50 = vadd.f32 %v1501_v31, %v1149_v43  ;;  %v1543_v52 = vadd.f32 %v1542_v33, %v1157_v46 }
 0x5b6   :  { %v1503_v34 = vpop.f32.mrf.mxu0  ;;  %v1544_v35 = vpop.f32.mrf.mxu1 }
 0x5b7   :  { %v1853_v58 = vpack.c.bf16 %v1502_v50, %v1500_v55  ;;  %v1854_v60 = vpack.c.bf16 %v1543_v52, %v1541_v56 }
 0x5b8   :  { %v1504_v36 = vpop.f32.mrf.mxu0  ;;  %v1545_v37 = vpop.f32.mrf.mxu1 }
 0x5b9   :  { %v1651_v2 = vrot.slane %v1853_v58, %v1650_v59  ;;  %v1658_v5 = vrot.slane %v1854_v60, %v1650_v59 }
 0x5bb   :  { %v1673_v13 = vcombine.low %v1651_v2, %v1658_v5 }
 0x5bd   :  { %v1681_v17 = vrot.slane %v1673_v13, %v1650_v59 }
 0x5d2   :  { %v1581_v63 = vpop.f32.mrf.mxu0  ;;  %v1622_v0 = vpop.f32.mrf.mxu1 }
 0x5d3   :  { %v1623_v1 = vadd.f32 %v1622_v0, %v1169_v57  ;;  %v1582_v6 = vadd.f32 %v1581_v63, %v1161_v61 }
 0x5d4   :  { %v1583_v3 = vpop.f32.mrf.mxu0  ;;  %v2036_v4 = vpop.f32.mrf.mxu1 }
 0x5d5   :  { %v1634_v7 = vpack.c.bf16 %v1623_v1, %v1623_v1  ;;  %v1584_v8 = vadd.f32 %v1583_v3, %v1165_v62 }
 0x5d6   :  { %v1585_v9 = vpop.f32.mrf.mxu0  ;;  %v1625_v10 = vpop.f32.mrf.mxu1 }
 0x5d7   :  { %v1855_v32 = vpack.c.bf16 %v1584_v8, %v1582_v6  ;;  %v1672_v14 = vrot.slane %v1634_v7, %v1650_v59 }
 0x5d8   :  { %v1586_v11 = vpop.f32.mrf.mxu0  ;;  %v2037_v12 = vpop.f32.mrf.mxu1 }
 0x5d9   :  { %v1665_v15 = vrot.slane %v1855_v32, %v1650_v59 }
 0x5db   :  { %v1674_v16 = vcombine.low %v1665_v15, %v1672_v14 }
 0x5dd   :  { %v1688_v18 = vrot.slane %v1674_v16, %v1650_v59 }
 0x5df   :  { %v1689_v19 = vcombine.low %v1681_v17, %v1688_v18 }
 0x5e1   :  { %1704 = vst.msk [vmem:[#allocation2] sm:$0x7f] %vm1703_vm1, %v1689_v19 }
 0x5e2   :  { %2204 = shalt.err (!%p2201_p4)
}
 0x5e3   :  { %1714 = dma.vmem_to_hbm [thread:$0]  %s1712_s11, 112, %s2774_s15, [#allocation3]  }
 0x5e4   :  { %2213 = dma.done.wait [#allocation3], 112  }
 0x5e5   :  { %2214 = vsyncadd [#allocation3], 4294967184 }
 0x5e6   :  { %1718 = vsyncpa [#allocation3], 1 }

</bundles_post_ra>
